<compile_context>
chip_gen: v6e
topology: v6e:2x2x1
jax: 0.10.0
libtpu: 0.0.40
codegen_flags: <defaults>
</compile_context>

<pallas_src>
import jax
import jax.numpy as jnp
from jax.experimental import pallas as pl
from jax.experimental.pallas import tpu as pltpu


_LANE = 128
_SUBLANE = 8

# VPU (scalar-weight broadcast-FMA) path while the fully-unrolled C_out*C_in FMA
# loop stays small and the contraction is too shallow to feed the MXU.
_VPU_MAX_FMA = 256
_MXU_MIN_CIN = 64


def _round_up(x, m):
    return ((x + m - 1) // m) * m


# --------------------------------------------------------------------------- #
# Kernels
# --------------------------------------------------------------------------- #
def _outconv_vpu_kernel(w_ref, b_ref, x_ref, o_ref):
    # w_ref: (C_out*C_in,) f32 SMEM (scalar prefetch)
    # b_ref: (C_out,)      f32 SMEM (scalar prefetch)
    # x_ref: (B_t, C_in,  R_t, 128) VMEM  -- sublane/lane-dense spatial slabs
    # o_ref: (B_t, C_out, R_t, 128) VMEM
    c_in = x_ref.shape[1]
    c_out = o_ref.shape[1]
    for co in range(c_out):
        # scalar * dense (B_t, R_t, 128) slab FMAs; scalar->vreg broadcast is ~free.
        acc = w_ref[co * c_in] * x_ref[:, 0, :, :].astype(jnp.float32) + b_ref[co]
        for ci in range(1, c_in):
            acc = acc + w_ref[co * c_in + ci] * x_ref[:, ci, :, :].astype(jnp.float32)
        o_ref[:, co, :, :] = acc.astype(o_ref.dtype)


def _outconv_mxu_kernel(x_ref, w_ref, b_ref, o_ref):
    # x_ref: (C_in, T) native dtype, w_ref: (C_out, C_in) native dtype,
    # b_ref: (C_out, 1) f32, o_ref: (C_out, T)
    # Native-dtype operands into the MXU, f32 accumulation (no pre-cast copies).
    acc = jnp.dot(w_ref[...], x_ref[...], preferred_element_type=jnp.float32)
    o_ref[...] = (acc + b_ref[...]).astype(o_ref.dtype)


# --------------------------------------------------------------------------- #
# Tiling heuristics
# --------------------------------------------------------------------------- #
def _pick_vpu_tiles(n, r, c_in, c_out, dtype_bytes):
    """Choose (b_tile, r_tile) so each grid step moves ~1-4 MiB:
      * amortizes the ~0.35us per-step grid overhead (small inputs collapse to one
        step over all batch images),
      * keeps the double-buffered in+out working set <= ~8 MiB (safe inside every
        generation's default scoped VMEM, incl. v5e's 16 MiB; no hidden sublane
        padding because the slabs are (multiple-of-8, 128)),
      * still leaves >= 4 grid steps on large inputs so v7x's two TensorCores and
        the DMA prefetch pipeline stay fed."""
    row_bytes = (c_in + c_out) * _LANE * dtype_bytes      # one (image, sublane-row)
    total_bytes = n * r * row_bytes
    step_budget = max(1 << 20, min(4 << 20, total_bytes // 4))
    rows_per_step = max(1, step_budget // row_bytes)
    if rows_per_step >= r:
        r_tile = r                                        # full spatial extent
        b_tile = max(1, min(n, rows_per_step // r))       # fold batch images
    else:
        b_tile = 1
        r_tile = min(r, max(_SUBLANE, (rows_per_step // _SUBLANE) * _SUBLANE))
    return b_tile, r_tile


def _pick_mxu_tile_hw(hw, c_in, c_out, dtype_bytes):
    """Lane-aligned spatial tile for the MXU path; VMEM budget accounts for
    sublane padding of the channel dims, and large images keep >= ~4 tiles."""
    sub = _SUBLANE * max(1, 4 // dtype_bytes)             # 8 (f32) / 16 (bf16) / 32 (i8)
    cin_p = _round_up(c_in, sub)
    cout_p = _round_up(c_out, sub)
    per_lane_bytes = 2 * (cin_p + cout_p) * dtype_bytes   # 2 = double buffering
    budget = 8 << 20
    max_tile = max(_LANE, (budget // per_lane_bytes) // _LANE * _LANE)
    cap = max(_LANE, _round_up(pl.cdiv(hw, 4), _LANE))    # >= 4 tiles when large
    tile = min(max_tile, cap)
    if hw < _LANE:
        tile = hw                                          # full-extent block
    return tile


# --------------------------------------------------------------------------- #
# Wrapper
# --------------------------------------------------------------------------- #
def outconv_forward(x_nchw, weight, bias):
    """1x1 Conv2d forward (PyTorch `outconv`), NCHW in / NCHW out.

    x_nchw: (N, C_in, H, W)
    weight: (C_out, C_in) or (C_out, C_in, 1, 1)   (kept in native precision)
    bias:   (C_out,)
    """
    N, C_in, H, W = x_nchw.shape
    weight = weight.reshape(weight.shape[0], C_in)
    C_out = weight.shape[0]
    HW = H * W
    dtype = x_nchw.dtype
    dtype_bytes = jnp.dtype(dtype).itemsize

    cost = pl.CostEstimate(
        flops=2 * N * HW * C_in * C_out,
        transcendentals=0,
        bytes_accessed=N * HW * (C_in + C_out) * dtype_bytes
        + (C_in * C_out + C_out) * 4,
    )

    use_vpu = (C_in * C_out <= _VPU_MAX_FMA) and (C_in < _MXU_MIN_CIN)

    if use_vpu:
        # ------- sublane/lane-dense VPU path (tiny channel counts) -------
        R = pl.cdiv(HW, _LANE)
        hw_pad = R * _LANE
        x4 = x_nchw.reshape(N, C_in, HW)                  # pure reshape, no transpose
        if hw_pad != HW:
            # TODO(synk): in-kernel tail-lane masking would avoid this extra HBM
            # pass; only hit when H*W is not a multiple of 128.
            x4 = jnp.pad(x4, ((0, 0), (0, 0), (0, hw_pad - HW)))
        x4 = x4.reshape(N, C_in, R, _LANE)

        b_tile, r_tile = _pick_vpu_tiles(N, R, C_in, C_out, dtype_bytes)
        grid = (pl.cdiv(N, b_tile), pl.cdiv(R, r_tile))   # ragged blocks masked by Pallas

        # f32 scalars in SMEM (upcast only -> no precision loss vs the torch ref).
        w_smem = weight.astype(jnp.float32).reshape(-1)
        b_smem = bias.astype(jnp.float32).reshape(-1)

        out4 = pl.pallas_call(
            _outconv_vpu_kernel,
            out_shape=jax.ShapeDtypeStruct((N, C_out, R, _LANE), dtype),
            grid_spec=pltpu.PrefetchScalarGridSpec(
                num_scalar_prefetch=2,                    # weight + bias -> SMEM
                grid=grid,
                in_specs=[
                    pl.BlockSpec((b_tile, C_in, r_tile, _LANE),
                                 lambda n, r, w, b: (n, 0, r, 0)),
                ],
                out_specs=pl.BlockSpec((b_tile, C_out, r_tile, _LANE),
                                       lambda n, r, w, b: (n, 0, r, 0)),
            ),
            compiler_params=pltpu.CompilerParams(
                dimension_semantics=("parallel", "parallel")),
            cost_estimate=cost,
        )(w_smem, b_smem, x4)

        out = out4.reshape(N, C_out, hw_pad)
        if hw_pad != HW:
            out = out[:, :, :HW]
        return out.reshape(N, C_out, H, W)

    # ------- MXU path (deep contractions): out = W @ X per lane-dense tile -------
    x_flat = x_nchw.reshape(N, C_in, HW)                  # pure reshape
    tile_hw = _pick_mxu_tile_hw(HW, C_in, C_out, dtype_bytes)
    grid = (N, pl.cdiv(HW, tile_hw))                      # ragged last tile masked

    b_col = bias.reshape(C_out, 1).astype(jnp.float32)

    out_flat = pl.pallas_call(
        _outconv_mxu_kernel,
        out_shape=jax.ShapeDtypeStruct((N, C_out, HW), dtype),
        grid_spec=pltpu.PrefetchScalarGridSpec(
            num_scalar_prefetch=0,
            grid=grid,
            in_specs=[
                pl.BlockSpec((None, C_in, tile_hw), lambda n, t: (n, 0, t)),
                pl.BlockSpec((C_out, C_in), lambda n, t: (0, 0)),   # resident, native dtype
                pl.BlockSpec((C_out, 1), lambda n, t: (0, 0)),      # resident bias (f32)
            ],
            out_specs=pl.BlockSpec((None, C_out, tile_hw), lambda n, t: (n, 0, t)),
        ),
        compiler_params=pltpu.CompilerParams(
            dimension_semantics=("parallel", "parallel")),
        cost_estimate=cost,
    )(x_flat, weight, b_col)

    return out_flat.reshape(N, C_out, H, W)


if __name__ == "__main__":
    key = jax.random.PRNGKey(0)
    k_x, k_w, k_b = jax.random.split(key, 3)

    N, C_in, H, W = 2, 4, 16, 16
    C_out = 3

    x = jax.random.normal(k_x, (N, C_in, H, W), dtype=jnp.float32)
    # Deterministic synthetic parameters (shapes match nn.Conv2d(in_ch, out_ch, 1)).
    weight = jax.random.normal(k_w, (C_out, C_in, 1, 1), dtype=jnp.float32) * 0.1
    bias = jax.random.normal(k_b, (C_out,), dtype=jnp.float32) * 0.1

    out = outconv_forward(x, weight, bias)
    out = jax.block_until_ready(out)

    # Reference check against plain-JAX einsum (same math as a 1x1 conv).
    ref = (jnp.einsum("nchw,oc->nohw", x, weight.reshape(C_out, C_in))
           + bias[None, :, None, None])
    assert out.shape == (N, C_out, H, W)
    assert jnp.allclose(out, ref, atol=1e-5, rtol=1e-5)

    print("KERNEL_OK")
</pallas_src>

<mosaic_0001>
module attributes {stable_mosaic.version = 11 : i64} {
  func.func @_outconv_vpu_kernel(%arg0: i32, %arg1: i32, %arg2: memref<12xf32, #tpu.memory_space<smem>>, %arg3: memref<3xf32, #tpu.memory_space<smem>>, %arg4: memref<2x4x2x128xf32, #tpu.memory_space<vmem>>, %arg5: memref<2x3x2x128xf32, #tpu.memory_space<vmem>>) attributes {dimension_semantics = [#tpu.dimension_semantics<parallel>, #tpu.dimension_semantics<parallel>], iteration_bounds = array<i64: 1, 1>, scalar_prefetch = 2 : i64, scratch_operands = 0 : i64, tpu.core_type = #tpu.core_type<tc>, window_params = [{transform_indices = @transform_0, window_bounds = array<i64: 2, 4, 2, 128>}, {transform_indices = @transform_1, window_bounds = array<i64: 2, 3, 2, 128>}]} {
    %c0 = arith.constant 0 : index
    %0 = memref.load %arg2[%c0] : memref<12xf32, #tpu.memory_space<smem>>
    %c0_0 = arith.constant 0 : index
    %c0_1 = arith.constant 0 : index
    %c0_2 = arith.constant 0 : index
    %c0_3 = arith.constant 0 : index
    %1 = vector.load %arg4[%c0_0, %c0_1, %c0_2, %c0_3] : memref<2x4x2x128xf32, #tpu.memory_space<vmem>>, vector<2x1x2x128xf32>
    %2 = vector.shape_cast %1 : vector<2x1x2x128xf32> to vector<2x2x128xf32>
    %3 = vector.broadcast %0 : f32 to vector<2x2x128xf32>
    %4 = arith.mulf %3, %2 : vector<2x2x128xf32>
    %c0_4 = arith.constant 0 : index
    %5 = memref.load %arg3[%c0_4] : memref<3xf32, #tpu.memory_space<smem>>
    %6 = vector.broadcast %5 : f32 to vector<2x2x128xf32>
    %7 = arith.addf %4, %6 : vector<2x2x128xf32>
    %c1 = arith.constant 1 : index
    %8 = memref.load %arg2[%c1] : memref<12xf32, #tpu.memory_space<smem>>
    %c0_5 = arith.constant 0 : index
    %c1_6 = arith.constant 1 : index
    %c0_7 = arith.constant 0 : index
    %c0_8 = arith.constant 0 : index
    %9 = vector.load %arg4[%c0_5, %c1_6, %c0_7, %c0_8] : memref<2x4x2x128xf32, #tpu.memory_space<vmem>>, vector<2x1x2x128xf32>
    %10 = vector.shape_cast %9 : vector<2x1x2x128xf32> to vector<2x2x128xf32>
    %11 = vector.broadcast %8 : f32 to vector<2x2x128xf32>
    %12 = arith.mulf %11, %10 : vector<2x2x128xf32>
    %13 = arith.addf %7, %12 : vector<2x2x128xf32>
    %c2 = arith.constant 2 : index
    %14 = memref.load %arg2[%c2] : memref<12xf32, #tpu.memory_space<smem>>
    %c0_9 = arith.constant 0 : index
    %c2_10 = arith.constant 2 : index
    %c0_11 = arith.constant 0 : index
    %c0_12 = arith.constant 0 : index
    %15 = vector.load %arg4[%c0_9, %c2_10, %c0_11, %c0_12] : memref<2x4x2x128xf32, #tpu.memory_space<vmem>>, vector<2x1x2x128xf32>
    %16 = vector.shape_cast %15 : vector<2x1x2x128xf32> to vector<2x2x128xf32>
    %17 = vector.broadcast %14 : f32 to vector<2x2x128xf32>
    %18 = arith.mulf %17, %16 : vector<2x2x128xf32>
    %19 = arith.addf %13, %18 : vector<2x2x128xf32>
    %c3 = arith.constant 3 : index
    %20 = memref.load %arg2[%c3] : memref<12xf32, #tpu.memory_space<smem>>
    %c0_13 = arith.constant 0 : index
    %c3_14 = arith.constant 3 : index
    %c0_15 = arith.constant 0 : index
    %c0_16 = arith.constant 0 : index
    %21 = vector.load %arg4[%c0_13, %c3_14, %c0_15, %c0_16] : memref<2x4x2x128xf32, #tpu.memory_space<vmem>>, vector<2x1x2x128xf32>
    %22 = vector.shape_cast %21 : vector<2x1x2x128xf32> to vector<2x2x128xf32>
    %23 = vector.broadcast %20 : f32 to vector<2x2x128xf32>
    %24 = arith.mulf %23, %22 : vector<2x2x128xf32>
    %25 = arith.addf %19, %24 : vector<2x2x128xf32>
    %c0_17 = arith.constant 0 : index
    %c0_18 = arith.constant 0 : index
    %c0_19 = arith.constant 0 : index
    %c0_20 = arith.constant 0 : index
    %26 = vector.load %arg5[%c0_17, %c0_18, %c0_19, %c0_20] : memref<2x3x2x128xf32, #tpu.memory_space<vmem>>, vector<2x1x2x128xf32>
    %27 = vector.shape_cast %26 : vector<2x1x2x128xf32> to vector<2x2x128xf32>
    %28 = vector.shape_cast %25 : vector<2x2x128xf32> to vector<2x1x2x128xf32>
    tpu.vector_store %arg5[%c0_17, %c0_18, %c0_19, %c0_20], %28 {strides = array<i32>} : memref<2x3x2x128xf32, #tpu.memory_space<vmem>>, vector<2x1x2x128xf32>,
    %c4 = arith.constant 4 : index
    %29 = memref.load %arg2[%c4] : memref<12xf32, #tpu.memory_space<smem>>
    %c0_21 = arith.constant 0 : index
    %c0_22 = arith.constant 0 : index
    %c0_23 = arith.constant 0 : index
    %c0_24 = arith.constant 0 : index
    %30 = vector.load %arg4[%c0_21, %c0_22, %c0_23, %c0_24] : memref<2x4x2x128xf32, #tpu.memory_space<vmem>>, vector<2x1x2x128xf32>
    %31 = vector.shape_cast %30 : vector<2x1x2x128xf32> to vector<2x2x128xf32>
    %32 = vector.broadcast %29 : f32 to vector<2x2x128xf32>
    %33 = arith.mulf %32, %31 : vector<2x2x128xf32>
    %c1_25 = arith.constant 1 : index
    %34 = memref.load %arg3[%c1_25] : memref<3xf32, #tpu.memory_space<smem>>
    %35 = vector.broadcast %34 : f32 to vector<2x2x128xf32>
    %36 = arith.addf %33, %35 : vector<2x2x128xf32>
    %c5 = arith.constant 5 : index
    %37 = memref.load %arg2[%c5] : memref<12xf32, #tpu.memory_space<smem>>
    %c0_26 = arith.constant 0 : index
    %c1_27 = arith.constant 1 : index
    %c0_28 = arith.constant 0 : index
    %c0_29 = arith.constant 0 : index
    %38 = vector.load %arg4[%c0_26, %c1_27, %c0_28, %c0_29] : memref<2x4x2x128xf32, #tpu.memory_space<vmem>>, vector<2x1x2x128xf32>
    %39 = vector.shape_cast %38 : vector<2x1x2x128xf32> to vector<2x2x128xf32>
    %40 = vector.broadcast %37 : f32 to vector<2x2x128xf32>
    %41 = arith.mulf %40, %39 : vector<2x2x128xf32>
    %42 = arith.addf %36, %41 : vector<2x2x128xf32>
    %c6 = arith.constant 6 : index
    %43 = memref.load %arg2[%c6] : memref<12xf32, #tpu.memory_space<smem>>
    %c0_30 = arith.constant 0 : index
    %c2_31 = arith.constant 2 : index
    %c0_32 = arith.constant 0 : index
    %c0_33 = arith.constant 0 : index
    %44 = vector.load %arg4[%c0_30, %c2_31, %c0_32, %c0_33] : memref<2x4x2x128xf32, #tpu.memory_space<vmem>>, vector<2x1x2x128xf32>
    %45 = vector.shape_cast %44 : vector<2x1x2x128xf32> to vector<2x2x128xf32>
    %46 = vector.broadcast %43 : f32 to vector<2x2x128xf32>
    %47 = arith.mulf %46, %45 : vector<2x2x128xf32>
    %48 = arith.addf %42, %47 : vector<2x2x128xf32>
    %c7 = arith.constant 7 : index
    %49 = memref.load %arg2[%c7] : memref<12xf32, #tpu.memory_space<smem>>
    %c0_34 = arith.constant 0 : index
    %c3_35 = arith.constant 3 : index
    %c0_36 = arith.constant 0 : index
    %c0_37 = arith.constant 0 : index
    %50 = vector.load %arg4[%c0_34, %c3_35, %c0_36, %c0_37] : memref<2x4x2x128xf32, #tpu.memory_space<vmem>>, vector<2x1x2x128xf32>
    %51 = vector.shape_cast %50 : vector<2x1x2x128xf32> to vector<2x2x128xf32>
    %52 = vector.broadcast %49 : f32 to vector<2x2x128xf32>
    %53 = arith.mulf %52, %51 : vector<2x2x128xf32>
    %54 = arith.addf %48, %53 : vector<2x2x128xf32>
    %c0_38 = arith.constant 0 : index
    %c1_39 = arith.constant 1 : index
    %c0_40 = arith.constant 0 : index
    %c0_41 = arith.constant 0 : index
    %55 = vector.load %arg5[%c0_38, %c1_39, %c0_40, %c0_41] : memref<2x3x2x128xf32, #tpu.memory_space<vmem>>, vector<2x1x2x128xf32>
    %56 = vector.shape_cast %55 : vector<2x1x2x128xf32> to vector<2x2x128xf32>
    %57 = vector.shape_cast %54 : vector<2x2x128xf32> to vector<2x1x2x128xf32>
    tpu.vector_store %arg5[%c0_38, %c1_39, %c0_40, %c0_41], %57 {strides = array<i32>} : memref<2x3x2x128xf32, #tpu.memory_space<vmem>>, vector<2x1x2x128xf32>,
    %c8 = arith.constant 8 : index
    %58 = memref.load %arg2[%c8] : memref<12xf32, #tpu.memory_space<smem>>
    %c0_42 = arith.constant 0 : index
    %c0_43 = arith.constant 0 : index
    %c0_44 = arith.constant 0 : index
    %c0_45 = arith.constant 0 : index
    %59 = vector.load %arg4[%c0_42, %c0_43, %c0_44, %c0_45] : memref<2x4x2x128xf32, #tpu.memory_space<vmem>>, vector<2x1x2x128xf32>
    %60 = vector.shape_cast %59 : vector<2x1x2x128xf32> to vector<2x2x128xf32>
    %61 = vector.broadcast %58 : f32 to vector<2x2x128xf32>
    %62 = arith.mulf %61, %60 : vector<2x2x128xf32>
    %c2_46 = arith.constant 2 : index
    %63 = memref.load %arg3[%c2_46] : memref<3xf32, #tpu.memory_space<smem>>
    %64 = vector.broadcast %63 : f32 to vector<2x2x128xf32>
    %65 = arith.addf %62, %64 : vector<2x2x128xf32>
    %c9 = arith.constant 9 : index
    %66 = memref.load %arg2[%c9] : memref<12xf32, #tpu.memory_space<smem>>
    %c0_47 = arith.constant 0 : index
    %c1_48 = arith.constant 1 : index
    %c0_49 = arith.constant 0 : index
    %c0_50 = arith.constant 0 : index
    %67 = vector.load %arg4[%c0_47, %c1_48, %c0_49, %c0_50] : memref<2x4x2x128xf32, #tpu.memory_space<vmem>>, vector<2x1x2x128xf32>
    %68 = vector.shape_cast %67 : vector<2x1x2x128xf32> to vector<2x2x128xf32>
    %69 = vector.broadcast %66 : f32 to vector<2x2x128xf32>
    %70 = arith.mulf %69, %68 : vector<2x2x128xf32>
    %71 = arith.addf %65, %70 : vector<2x2x128xf32>
    %c10 = arith.constant 10 : index
    %72 = memref.load %arg2[%c10] : memref<12xf32, #tpu.memory_space<smem>>
    %c0_51 = arith.constant 0 : index
    %c2_52 = arith.constant 2 : index
    %c0_53 = arith.constant 0 : index
    %c0_54 = arith.constant 0 : index
    %73 = vector.load %arg4[%c0_51, %c2_52, %c0_53, %c0_54] : memref<2x4x2x128xf32, #tpu.memory_space<vmem>>, vector<2x1x2x128xf32>
    %74 = vector.shape_cast %73 : vector<2x1x2x128xf32> to vector<2x2x128xf32>
    %75 = vector.broadcast %72 : f32 to vector<2x2x128xf32>
    %76 = arith.mulf %75, %74 : vector<2x2x128xf32>
    %77 = arith.addf %71, %76 : vector<2x2x128xf32>
    %c11 = arith.constant 11 : index
    %78 = memref.load %arg2[%c11] : memref<12xf32, #tpu.memory_space<smem>>
    %c0_55 = arith.constant 0 : index
    %c3_56 = arith.constant 3 : index
    %c0_57 = arith.constant 0 : index
    %c0_58 = arith.constant 0 : index
    %79 = vector.load %arg4[%c0_55, %c3_56, %c0_57, %c0_58] : memref<2x4x2x128xf32, #tpu.memory_space<vmem>>, vector<2x1x2x128xf32>
    %80 = vector.shape_cast %79 : vector<2x1x2x128xf32> to vector<2x2x128xf32>
    %81 = vector.broadcast %78 : f32 to vector<2x2x128xf32>
    %82 = arith.mulf %81, %80 : vector<2x2x128xf32>
    %83 = arith.addf %77, %82 : vector<2x2x128xf32>
    %c0_59 = arith.constant 0 : index
    %c2_60 = arith.constant 2 : index
    %c0_61 = arith.constant 0 : index
    %c0_62 = arith.constant 0 : index
    %84 = vector.load %arg5[%c0_59, %c2_60, %c0_61, %c0_62] : memref<2x3x2x128xf32, #tpu.memory_space<vmem>>, vector<2x1x2x128xf32>
    %85 = vector.shape_cast %84 : vector<2x1x2x128xf32> to vector<2x2x128xf32>
    %86 = vector.shape_cast %83 : vector<2x2x128xf32> to vector<2x1x2x128xf32>
    tpu.vector_store %arg5[%c0_59, %c2_60, %c0_61, %c0_62], %86 {strides = array<i32>} : memref<2x3x2x128xf32, #tpu.memory_space<vmem>>, vector<2x1x2x128xf32>,
    return
  }
  func.func @transform_0(%arg0: i32, %arg1: i32, %arg2: memref<12xf32, #tpu.memory_space<smem>>, %arg3: memref<3xf32, #tpu.memory_space<smem>>) -> (i32, i32, i32, i32) {
    %c0_i32 = arith.constant 0 : i32
    %c0_i32_0 = arith.constant 0 : i32
    %c0_i32_1 = arith.constant 0 : i32
    return %arg0, %c0_i32, %arg1, %c0_i32_0 : i32, i32, i32, i32
  }
  func.func @transform_1(%arg0: i32, %arg1: i32, %arg2: memref<12xf32, #tpu.memory_space<smem>>, %arg3: memref<3xf32, #tpu.memory_space<smem>>) -> (i32, i32, i32, i32) {
    %c0_i32 = arith.constant 0 : i32
    %c0_i32_0 = arith.constant 0 : i32
    %c0_i32_1 = arith.constant 0 : i32
    return %arg0, %c0_i32, %arg1, %c0_i32_0 : i32, i32, i32, i32
  }
}

</mosaic_0001>

<bundles_post_ra>
// kernel: tpu_custom_call.1
= control target key start
LH: loop header
LB: loop body
LE: loop exit
PB: predicated region body
PF: predicated region fallthrough
CT: control target
= control target key end

     0   :  { %s248_s12 = smov [#allocation3]   ;;  %s325_s0 = inlined_call_operand.hbm [shape: f32[12], index: 0, kind: input, shape index: {}]   ;;  %s326_s2 = inlined_call_operand.hbm [shape: f32[2,4,2,128], index: 2, kind: input, shape index: {}]   ;;  %s327_s3 = inlined_call_operand.hbm [shape: f32[2,3,2,128], index: 3, kind: output, shape index: {}]   ;;  %s328_s1 = inlined_call_operand.vmem [shape: f32[3], index: 1, kind: input, shape index: {}]  }
   0x1   :  { %9 = dma.hbm_to_smem %s325_s0, 16, %s248_s12, [#allocation2] }
   0x2   :  { %s10_s17 = sshll.u32 %s328_s1, 4  ;;  %s11_s17 = int_to_ptr.vmem [resolvable:$true] %s10_s17 }
   0x3   :  { %s190_s18 = scalar_lea.vmem %s11_s17, 16  ;;  %p195_p1 = scmp.lt.s32.totalorder %s11_s17, %s11_s17 }
   0x4   :  { %p191_p0 = scmp.ne.s32.totalorder %s11_s17, %s190_s18  ;;  %p196_p2 = scmp.lt.s32.totalorder %s190_s18, %s190_s18 }
   0x6   :  { %p197_p3 = por %p196_p2, %p195_p1 }
   0x8   :  { %p198_p4 = pnand %p197_p3, %p191_p0 }
   0xa   :  { %201 = shalt.err (!%p198_p4)  }
   0xb   :  { %s249_s19 = smov [#allocation4]  }
   0xc   :  { %13 = dma.vmem_to_smem %s11_s17, 16, %s249_s19, [#allocation2] }
   0xd   :  { %242 = dma.done.wait [#allocation2], 32 }
   0xe   :  { %243 = vsyncadd [#allocation2], 4294967264 }
   0xf   :  { %15 = sfence }
  0x10   :  { %16 = vsyncpa [#allocation6], 0 }
  0x11   :  { %17 = vsyncpa [#allocation7], 0  ;;  %s250_s0 = smov [#allocation5]  }
  0x12   :  { %s23_s20 = sshll.u32 %s250_s0, 4  ;;  %s24_s20 = int_to_ptr.vmem [resolvable:$true] %s23_s20 }
  0x13   :  { %s210_s21 = scalar_lea.vmem %s24_s20, 256  ;;  %p215_p6 = scmp.lt.s32.totalorder %s24_s20, %s24_s20 }
  0x14   :  { %p211_p5 = scmp.ne.s32.totalorder %s24_s20, %s210_s21  ;;  %p216_p7 = scmp.lt.s32.totalorder %s210_s21, %s210_s21 }
  0x16   :  { %p217_p8 = por %p216_p7, %p215_p6 }
  0x18   :  { %p218_p9 = pnand %p217_p8, %p211_p5 }
  0x1a   :  { %221 = shalt.err (!%p218_p9)
}
  0x1b   :  { %s251_s1 = smov 32   ;;  %s252_s22 = smov 2  }
  0x1c   :  { %29 = dma.hbm_to_vmem [thread:$0]  %s326_s2, 256, %s24_s20, [#allocation6], %s251_s1, %s251_s1, %s252_s22  }
  0x1d   :  { %244 = dma.done.wait [#allocation6], 256  }
  0x1e   :  { %245 = vsyncadd [#allocation6], 4294967040  ;;  %s33_s25 = sld [smem:[#allocation3]]  ;;  %v34_v0 = vld [vmem:[#allocation5] sm:$0x3]  ;;  %s253_s12 = smov [#allocation8]  }
  0x1f   :  { %s39_s26 = sld [smem:[#allocation4]]  ;;  %v45_v2 = vld [vmem:[#allocation5 + $0x2] sm:$0x3]  ;;  %v54_v5 = vld [vmem:[#allocation5 + $0x4] sm:$0x3]  ;;  %s151_s13 = sshll.u32 %s253_s12, 4  ;;  %s152_s13 = int_to_ptr.vmem [resolvable:$true] %s151_s13 }
  0x20   :  { %s163_s27 = sld [smem:[#allocation3 + $0x1]]  ;;  %v35_v6 = vld [vmem:[#allocation5 + $0x8] sm:$0x3]  ;;  %v46_v7 = vld [vmem:[#allocation5 + $0xa] sm:$0x3]  ;;  %s222_s14 = scalar_lea.vmem %s152_s13, 192 }
  0x21   :  { %s164_s28 = sld [smem:[#allocation3 + $0x2]]  ;;  %v63_v9 = vld [vmem:[#allocation5 + $0x6] sm:$0x3]  ;;  %v55_v11 = vld [vmem:[#allocation5 + $0xc] sm:$0x3]  ;;  %p223_p10 = scmp.ne.s32.totalorder %s152_s13, %s222_s14 }
  0x22   :  { %s286_s29 = sld [smem:[#allocation3 + $0x3]]  ;;  %v64_v16 = vld [vmem:[#allocation5 + $0xe] sm:$0x3]  ;;  %v73_v17 = vld [vmem:[#allocation5] sm:$0x3]  ;;  %p227_p11 = scmp.lt.s32.totalorder %s152_s13, %s152_s13 }
  0x23   :  { %s288_s30 = sld [smem:[#allocation3 + $0x4]]  ;;  %v74_v22 = vld [vmem:[#allocation5 + $0x8] sm:$0x3]  ;;  %v83_v32 = vld [vmem:[#allocation5 + $0x2] sm:$0x3]  ;;  %p228_p12 = scmp.lt.s32.totalorder %s222_s14, %s222_s14 }
  0x24   :  { %v36_v1 = vstv %s33_s25  ;;  %s290_s2 = sld [smem:[#allocation4 + $0x1]]  ;;  %v84_v33 = vld [vmem:[#allocation5 + $0xa] sm:$0x3]  ;;  %v91_v36 = vld [vmem:[#allocation5 + $0x4] sm:$0x3] }
  0x25   :  { %v37_v3 = vmul.f32 %v36_v1, %v34_v0  ;;  %v40_v4 = vstv %s39_s26  ;;  %v38_v10 = vmul.f32 %v36_v1, %v35_v6  ;;  %s293_s4 = sld [smem:[#allocation3 + $0x5]]  ;;  %v92_v37 = vld [vmem:[#allocation5 + $0xc] sm:$0x3]  ;;  %v99_v41 = vld [vmem:[#allocation5 + $0x6] sm:$0x3]  ;;  %p229_p13 = por %p228_p12, %p227_p11 }
  0x26   :  { %v47_v8 = vstv %s163_s27  ;;  %s296_s5 = sld [smem:[#allocation3 + $0x6]]  ;;  %v100_v43 = vld [vmem:[#allocation5 + $0xe] sm:$0x3]  ;;  %v110_v50 = vld [vmem:[#allocation5] sm:$0x3] }
  0x27   :  { %v41_v12 = vadd.f32 %v40_v4, %v37_v3  ;;  %v48_v13 = vmul.f32 %v47_v8, %v45_v2  ;;  %v56_v14 = vstv %s164_s28  ;;  %v49_v15 = vmul.f32 %v47_v8, %v46_v7  ;;  %s298_s6 = sld [smem:[#allocation3 + $0x7]]  ;;  %v120_v55 = vld [vmem:[#allocation5 + $0x2] sm:$0x3]  ;;  %v111_v56 = vld [vmem:[#allocation5 + $0x8] sm:$0x3]  ;;  %p230_p0 = pnand %p229_p13, %p223_p10 }
  0x28   :  { %v57_v18 = vmul.f32 %v56_v14, %v54_v5  ;;  %v65_v19 = vstv %s286_s29  ;;  %v42_v20 = vadd.f32 %v40_v4, %v38_v10  ;;  %v58_v21 = vmul.f32 %v56_v14, %v55_v11  ;;  %s300_s7 = sld [smem:[#allocation3 + $0x8]]  ;;  %v121_v57 = vld [vmem:[#allocation5 + $0xa] sm:$0x3]  ;;  %v128_v60 = vld [vmem:[#allocation5 + $0x4] sm:$0x3] }
  0x29   :  { %v50_v23 = vadd.f32 %v48_v13, %v41_v12  ;;  %v66_v24 = vmul.f32 %v65_v19, %v63_v9  ;;  %v75_v25 = vstv %s288_s30  ;;  %v67_v27 = vmul.f32 %v65_v19, %v64_v16  ;;  %s302_s8 = sld [smem:[#allocation4 + $0x2]]  ;;  %v129_v1 = vld [vmem:[#allocation5 + $0xc] sm:$0x3]  ;;  %v136_v4 = vld [vmem:[#allocation5 + $0x6] sm:$0x3] }
  0x2a   :  { %v51_v26 = vadd.f32 %v49_v15, %v42_v20  ;;  %v76_v28 = vmul.f32 %v75_v25, %v73_v17  ;;  %v77_v29 = vmul.f32 %v75_v25, %v74_v22  ;;  %v79_v35 = vstv %s290_s2  ;;  %s305_s9 = sld [smem:[#allocation3 + $0x9]]  ;;  %v137_v11 = vld [vmem:[#allocation5 + $0xe] sm:$0x3] }
  0x2b   :  { %v59_v30 = vadd.f32 %v57_v18, %v50_v23  ;;  %v85_v40 = vstv %s293_s4  ;;  %s308_s10 = sld [smem:[#allocation3 + $0xa]] }
  0x2c   :  { %v60_v31 = vadd.f32 %v58_v21, %v51_v26  ;;  %v80_v39 = vadd.f32 %v79_v35, %v76_v28  ;;  %v81_v42 = vadd.f32 %v79_v35, %v77_v29  ;;  %v86_v44 = vmul.f32 %v85_v40, %v83_v32  ;;  %s311_s11 = sld [smem:[#allocation3 + $0xb]] }
  0x2d   :  { %v68_v34 = vadd.f32 %v66_v24, %v59_v30  ;;  %v93_v45 = vstv %s296_s5  ;;  %v87_v46 = vmul.f32 %v85_v40, %v84_v33  ;;  %v101_v48 = vstv %s298_s6 }
  0x2e   :  { %v69_v38 = vadd.f32 %v67_v27, %v60_v31  ;;  %v94_v47 = vmul.f32 %v93_v45, %v91_v36  ;;  %v95_v49 = vmul.f32 %v93_v45, %v92_v37  ;;  %v88_v51 = vadd.f32 %v86_v44, %v80_v39 }
  0x2f   :  { %70 = vst [vmem:[#allocation8] sm:$0x3] %v68_v34  ;;  %v102_v52 = vmul.f32 %v101_v48, %v99_v41  ;;  %v89_v53 = vadd.f32 %v87_v46, %v81_v42  ;;  %v103_v54 = vmul.f32 %v101_v48, %v100_v43  ;;  %v112_v58 = vstv %s300_s7 }
  0x30   :  { %71 = vst [vmem:[#allocation8 + $0x6] sm:$0x3] %v69_v38  ;;  %v116_v59 = vstv %s302_s8  ;;  %v96_v61 = vadd.f32 %v94_v47, %v88_v51  ;;  %v113_v63 = vmul.f32 %v112_v58, %v110_v50  ;;  %v122_v0 = vstv %s305_s9 }
  0x31   :  { %v97_v62 = vadd.f32 %v95_v49, %v89_v53  ;;  %v123_v2 = vmul.f32 %v122_v0, %v120_v55  ;;  %v130_v3 = vstv %s308_s10  ;;  %v114_v5 = vmul.f32 %v112_v58, %v111_v56 }
  0x32   :  { %v124_v6 = vmul.f32 %v122_v0, %v121_v57  ;;  %v104_v7 = vadd.f32 %v102_v52, %v96_v61  ;;  %v117_v9 = vadd.f32 %v116_v59, %v113_v63  ;;  %v131_v10 = vmul.f32 %v130_v3, %v128_v60 }
  0x33   :  { %v105_v8 = vadd.f32 %v103_v54, %v97_v62  ;;  %v138_v12 = vstv %s311_s11  ;;  %v118_v13 = vadd.f32 %v116_v59, %v114_v5  ;;  %v132_v14 = vmul.f32 %v130_v3, %v129_v1 }
  0x34   :  { %107 = vst [vmem:[#allocation8 + $0x2] sm:$0x3] %v104_v7  ;;  %v125_v15 = vadd.f32 %v123_v2, %v117_v9  ;;  %v139_v16 = vmul.f32 %v138_v12, %v136_v4  ;;  %v140_v18 = vmul.f32 %v138_v12, %v137_v11 }
  0x35   :  { %108 = vst [vmem:[#allocation8 + $0x8] sm:$0x3] %v105_v8  ;;  %v126_v17 = vadd.f32 %v124_v6, %v118_v13 }
  0x36   :  { %v133_v19 = vadd.f32 %v131_v10, %v125_v15 }
  0x37   :  { %v134_v20 = vadd.f32 %v132_v14, %v126_v17 }
  0x38   :  { %v141_v21 = vadd.f32 %v139_v16, %v133_v19 }
  0x39   :  { %v142_v22 = vadd.f32 %v140_v18, %v134_v20 }
  0x3a   :  { %144 = vst [vmem:[#allocation8 + $0x4] sm:$0x3] %v141_v21 }
  0x3b   :  { %145 = vst [vmem:[#allocation8 + $0xa] sm:$0x3] %v142_v22 }
  0x3c   :  { %233 = shalt.err (!%p230_p0)
}
  0x3d   :  { %157 = dma.vmem_to_hbm [thread:$0]  %s152_s13, 192, %s327_s3, [#allocation7], %s251_s1, %s251_s1, %s252_s22  }
  0x3e   :  { %246 = dma.done.wait [#allocation7], 192  }
  0x3f   :  { %247 = vsyncadd [#allocation7], 4294967104 }
  0x40   :  { %161 = vsyncpa [#allocation6], 1 }
  0x41   :  { %162 = vsyncpa [#allocation7], 1 }

</bundles_post_ra>
